<compile_context>
chip_gen: v5e
topology: v5e:2x2
jax: 0.10.0
libtpu: 0.0.40
codegen_flags: <defaults>
</compile_context>

<pallas_src>
import jax
import jax.numpy as jnp
from jax.experimental import pallas as pl
from jax.experimental.pallas import tpu as pltpu


def _sigmoid(z):
    # exp -> EUP, approximate reciprocal -> EUP; both ride the otherwise-empty EUP slot.
    return pl.reciprocal(1.0 + jnp.exp(-z), approx=True)


def _mlp_kernel(x_ref, w1_ref, b1_ref, w2_ref, b2_ref, w3_ref, b3_ref, o_ref):
    # Lane-dense layout: batch on the last (128-lane) axis.
    x = x_ref[...]                                                       # (9, TB)

    h1 = _sigmoid(jnp.dot(w1_ref[...], x,
                          preferred_element_type=jnp.float32) + b1_ref[...])   # (32, TB)
    h2 = _sigmoid(jnp.dot(w2_ref[...], h1,
                          preferred_element_type=jnp.float32) + b2_ref[...])   # (8, TB)
    h3 = _sigmoid(jnp.dot(w3_ref[...], h2,
                          preferred_element_type=jnp.float32) + b3_ref[...])   # (1, TB)

    o_ref[...] = h3.astype(o_ref.dtype)


def mlp_forward(x, params, *, tile_b=1024):
    """x: (..., 9) float32  ->  (..., 1) float32 (Linear applied over the last axis)."""
    w1, b1, w2, b2, w3, b3 = params
    lead_shape = x.shape[:-1]
    xb = x.reshape(-1, x.shape[-1]).astype(jnp.float32)                  # (B, 9)
    B = xb.shape[0]

    # Pad batch to a multiple of tile_b (itself a multiple of 128) so every grid
    # step is a full, unmasked, lane-aligned block.
    n_tiles = max(1, pl.cdiv(B, tile_b))
    B_pad = n_tiles * tile_b
    if B_pad != B:
        xb = jnp.pad(xb, ((0, B_pad - B), (0, 0)))

    xt = xb.T                                                            # (9, B_pad), lane-dense

    def weight_spec(a):
        # Full-array block, constant index map -> stays resident in VMEM across tiles.
        return pl.BlockSpec(a.shape, lambda i: (0, 0))

    out = pl.pallas_call(
        _mlp_kernel,
        out_shape=jax.ShapeDtypeStruct((1, B_pad), jnp.float32),
        grid=(n_tiles,),
        in_specs=[
            pl.BlockSpec((9, tile_b), lambda i: (0, i)),   # activations: tiled over batch
            weight_spec(w1), weight_spec(b1),
            weight_spec(w2), weight_spec(b2),
            weight_spec(w3), weight_spec(b3),
        ],
        out_specs=pl.BlockSpec((1, tile_b), lambda i: (0, i)),
        compiler_params=pltpu.CompilerParams(
            dimension_semantics=("parallel",),             # shard batch tiles across TCs (v7x)
        ),
    )(xt, w1, b1, w2, b2, w3, b3)

    return out[0, :B].reshape(*lead_shape, 1)


def init_params(key):
    """Deterministic init matching PyTorch Linear shapes.
    Weights kept PyTorch-native (out, in); biases stored as (out, 1) column vectors."""
    ks = jax.random.split(key, 6)

    def linear(kw, kb, fan_in, fan_out):
        bound = 1.0 / jnp.sqrt(jnp.float32(fan_in))
        w = jax.random.uniform(kw, (fan_out, fan_in), jnp.float32, -bound, bound)
        b = jax.random.uniform(kb, (fan_out, 1), jnp.float32, -bound, bound)
        return w, b

    w1, b1 = linear(ks[0], ks[1], 9, 32)
    w2, b2 = linear(ks[2], ks[3], 32, 8)
    w3, b3 = linear(ks[4], ks[5], 8, 1)
    return w1, b1, w2, b2, w3, b3


def reference_forward(x, params):
    w1, b1, w2, b2, w3, b3 = params
    h = jax.nn.sigmoid(x @ w1.T + b1[:, 0])
    h = jax.nn.sigmoid(h @ w2.T + b2[:, 0])
    return jax.nn.sigmoid(h @ w3.T + b3[:, 0])


if __name__ == "__main__":
    key = jax.random.PRNGKey(0)
    k_param, k_x1, k_x2 = jax.random.split(key, 3)

    params = init_params(k_param)

    # Multi-dimensional input; Linear applies over the trailing dim of size 9.
    x1 = jax.random.normal(k_x1, (2, 4, 9), jnp.float32)
    out1 = jax.block_until_ready(mlp_forward(x1, params))
    ref1 = reference_forward(x1, params)
    assert out1.shape == (2, 4, 1), out1.shape
    assert jnp.allclose(out1, ref1, atol=2e-3, rtol=2e-3), "mismatch vs reference (x1)"

    # Deeper input exercising multiple grid tiles + batch padding (B=300 -> 3 tiles of 128).
    x2 = jax.random.normal(k_x2, (3, 5, 20, 9), jnp.float32)
    out2 = jax.block_until_ready(mlp_forward(x2, params, tile_b=128))
    ref2 = reference_forward(x2, params)
    assert out2.shape == (3, 5, 20, 1), out2.shape
    assert jnp.allclose(out2, ref2, atol=2e-3, rtol=2e-3), "mismatch vs reference (x2)"

    print("KERNEL_OK")
</pallas_src>

<mosaic_0001>
module attributes {stable_mosaic.version = 11 : i64} {
  func.func @_mlp_kernel(%arg0: i32, %arg1: memref<9x1024xf32, #tpu.memory_space<vmem>>, %arg2: memref<32x9xf32, #tpu.memory_space<vmem>>, %arg3: memref<32x1xf32, #tpu.memory_space<vmem>>, %arg4: memref<8x32xf32, #tpu.memory_space<vmem>>, %arg5: memref<8x1xf32, #tpu.memory_space<vmem>>, %arg6: memref<1x8xf32, #tpu.memory_space<vmem>>, %arg7: memref<1x1xf32, #tpu.memory_space<vmem>>, %arg8: memref<1x1024xf32, #tpu.memory_space<vmem>>) attributes {dimension_semantics = [#tpu.dimension_semantics<parallel>], iteration_bounds = array<i64: 1>, scalar_prefetch = 0 : i64, scratch_operands = 0 : i64, tpu.core_type = #tpu.core_type<tc>, window_params = [{transform_indices = @transform_0, window_bounds = array<i64: 9, 1024>}, {pipeline_mode = #tpu.pipeline_mode<synchronous>, transform_indices = @transform_1, window_bounds = array<i64: 32, 9>}, {pipeline_mode = #tpu.pipeline_mode<synchronous>, transform_indices = @transform_2, window_bounds = array<i64: 32, 1>}, {pipeline_mode = #tpu.pipeline_mode<synchronous>, transform_indices = @transform_3, window_bounds = array<i64: 8, 32>}, {pipeline_mode = #tpu.pipeline_mode<synchronous>, transform_indices = @transform_4, window_bounds = array<i64: 8, 1>}, {pipeline_mode = #tpu.pipeline_mode<synchronous>, transform_indices = @transform_5, window_bounds = array<i64: 1, 8>}, {pipeline_mode = #tpu.pipeline_mode<synchronous>, transform_indices = @transform_6, window_bounds = array<i64: 1, 1>}, {transform_indices = @transform_7, window_bounds = array<i64: 1, 1024>}]} {
    %c0 = arith.constant 0 : index
    %c0_0 = arith.constant 0 : index
    %0 = vector.load %arg1[%c0, %c0_0] : memref<9x1024xf32, #tpu.memory_space<vmem>>, vector<9x1024xf32>
    %c0_1 = arith.constant 0 : index
    %c0_2 = arith.constant 0 : index
    %1 = vector.load %arg2[%c0_1, %c0_2] : memref<32x9xf32, #tpu.memory_space<vmem>>, vector<32x9xf32>
    %cst = arith.constant dense<0.000000e+00> : vector<32x1024xf32>
    %2 = tpu.matmul %1, %0, %cst {dimension_numbers = #tpu.dot_dimension_numbers<[1], [0], [0], [1], [0, 0, 1, 1], [], []>} : vector<32x9xf32>, vector<9x1024xf32>, vector<32x1024xf32> -> vector<32x1024xf32>
    %c0_3 = arith.constant 0 : index
    %c0_4 = arith.constant 0 : index
    %3 = vector.load %arg3[%c0_3, %c0_4] : memref<32x1xf32, #tpu.memory_space<vmem>>, vector<32x1xf32>
    %4 = vector.broadcast %3 : vector<32x1xf32> to vector<32x1024xf32>
    %5 = arith.addf %2, %4 : vector<32x1024xf32>
    %cst_5 = arith.constant 0.000000e+00 : f32
    %6 = vector.broadcast %cst_5 : f32 to vector<32x1024xf32>
    %7 = arith.subf %6, %5 : vector<32x1024xf32>
    %8 = math.exp %7 : vector<32x1024xf32>
    %cst_6 = arith.constant 1.000000e+00 : f32
    %9 = vector.broadcast %cst_6 : f32 to vector<32x1024xf32>
    %10 = arith.addf %9, %8 : vector<32x1024xf32>
    %11 = tpu.reciprocal %10 {approx = true} : vector<32x1024xf32> -> vector<32x1024xf32>
    %c0_7 = arith.constant 0 : index
    %c0_8 = arith.constant 0 : index
    %12 = vector.load %arg4[%c0_7, %c0_8] : memref<8x32xf32, #tpu.memory_space<vmem>>, vector<8x32xf32>
    %cst_9 = arith.constant dense<0.000000e+00> : vector<8x1024xf32>
    %13 = tpu.matmul %12, %11, %cst_9 {dimension_numbers = #tpu.dot_dimension_numbers<[1], [0], [0], [1], [0, 0, 1, 1], [], []>} : vector<8x32xf32>, vector<32x1024xf32>, vector<8x1024xf32> -> vector<8x1024xf32>
    %c0_10 = arith.constant 0 : index
    %c0_11 = arith.constant 0 : index
    %14 = vector.load %arg5[%c0_10, %c0_11] : memref<8x1xf32, #tpu.memory_space<vmem>>, vector<8x1xf32>
    %15 = vector.broadcast %14 : vector<8x1xf32> to vector<8x1024xf32>
    %16 = arith.addf %13, %15 : vector<8x1024xf32>
    %cst_12 = arith.constant 0.000000e+00 : f32
    %17 = vector.broadcast %cst_12 : f32 to vector<8x1024xf32>
    %18 = arith.subf %17, %16 : vector<8x1024xf32>
    %19 = math.exp %18 : vector<8x1024xf32>
    %cst_13 = arith.constant 1.000000e+00 : f32
    %20 = vector.broadcast %cst_13 : f32 to vector<8x1024xf32>
    %21 = arith.addf %20, %19 : vector<8x1024xf32>
    %22 = tpu.reciprocal %21 {approx = true} : vector<8x1024xf32> -> vector<8x1024xf32>
    %c0_14 = arith.constant 0 : index
    %c0_15 = arith.constant 0 : index
    %23 = vector.load %arg6[%c0_14, %c0_15] : memref<1x8xf32, #tpu.memory_space<vmem>>, vector<1x8xf32>
    %cst_16 = arith.constant dense<0.000000e+00> : vector<1x1024xf32>
    %24 = tpu.matmul %23, %22, %cst_16 {dimension_numbers = #tpu.dot_dimension_numbers<[1], [0], [0], [1], [0, 0, 1, 1], [], []>} : vector<1x8xf32>, vector<8x1024xf32>, vector<1x1024xf32> -> vector<1x1024xf32>
    %c0_17 = arith.constant 0 : index
    %c0_18 = arith.constant 0 : index
    %25 = vector.load %arg7[%c0_17, %c0_18] : memref<1x1xf32, #tpu.memory_space<vmem>>, vector<1x1xf32>
    %26 = vector.broadcast %25 : vector<1x1xf32> to vector<1x1024xf32>
    %27 = arith.addf %24, %26 : vector<1x1024xf32>
    %cst_19 = arith.constant 0.000000e+00 : f32
    %28 = vector.broadcast %cst_19 : f32 to vector<1x1024xf32>
    %29 = arith.subf %28, %27 : vector<1x1024xf32>
    %30 = math.exp %29 : vector<1x1024xf32>
    %cst_20 = arith.constant 1.000000e+00 : f32
    %31 = vector.broadcast %cst_20 : f32 to vector<1x1024xf32>
    %32 = arith.addf %31, %30 : vector<1x1024xf32>
    %33 = tpu.reciprocal %32 {approx = true} : vector<1x1024xf32> -> vector<1x1024xf32>
    %c0_21 = arith.constant 0 : index
    %c0_22 = arith.constant 0 : index
    %34 = vector.load %arg8[%c0_21, %c0_22] : memref<1x1024xf32, #tpu.memory_space<vmem>>, vector<1x1024xf32>
    tpu.vector_store %arg8[%c0_21, %c0_22], %33 {strides = array<i32>} : memref<1x1024xf32, #tpu.memory_space<vmem>>, vector<1x1024xf32>,
    return
  }
  func.func @transform_0(%arg0: i32) -> (i32, i32) {
    %c0_i32 = arith.constant 0 : i32
    %c0_i32_0 = arith.constant 0 : i32
    return %c0_i32, %arg0 : i32, i32
  }
  func.func @transform_1(%arg0: i32) -> (i32, i32) {
    %c0_i32 = arith.constant 0 : i32
    %c0_i32_0 = arith.constant 0 : i32
    %c0_i32_1 = arith.constant 0 : i32
    return %c0_i32, %c0_i32_0 : i32, i32
  }
  func.func @transform_2(%arg0: i32) -> (i32, i32) {
    %c0_i32 = arith.constant 0 : i32
    %c0_i32_0 = arith.constant 0 : i32
    %c0_i32_1 = arith.constant 0 : i32
    return %c0_i32, %c0_i32_0 : i32, i32
  }
  func.func @transform_3(%arg0: i32) -> (i32, i32) {
    %c0_i32 = arith.constant 0 : i32
    %c0_i32_0 = arith.constant 0 : i32
    %c0_i32_1 = arith.constant 0 : i32
    return %c0_i32, %c0_i32_0 : i32, i32
  }
  func.func @transform_4(%arg0: i32) -> (i32, i32) {
    %c0_i32 = arith.constant 0 : i32
    %c0_i32_0 = arith.constant 0 : i32
    %c0_i32_1 = arith.constant 0 : i32
    return %c0_i32, %c0_i32_0 : i32, i32
  }
  func.func @transform_5(%arg0: i32) -> (i32, i32) {
    %c0_i32 = arith.constant 0 : i32
    %c0_i32_0 = arith.constant 0 : i32
    %c0_i32_1 = arith.constant 0 : i32
    return %c0_i32, %c0_i32_0 : i32, i32
  }
  func.func @transform_6(%arg0: i32) -> (i32, i32) {
    %c0_i32 = arith.constant 0 : i32
    %c0_i32_0 = arith.constant 0 : i32
    %c0_i32_1 = arith.constant 0 : i32
    return %c0_i32, %c0_i32_0 : i32, i32
  }
  func.func @transform_7(%arg0: i32) -> (i32, i32) {
    %c0_i32 = arith.constant 0 : i32
    %c0_i32_0 = arith.constant 0 : i32
    return %c0_i32, %arg0 : i32, i32
  }
}

</mosaic_0001>

<bundles_post_ra>
// kernel: tpu_custom_call.1
= control target key start
LH: loop header
LB: loop body
LE: loop exit
PB: predicated region body
PF: predicated region fallthrough
CT: control target
= control target key end

     0   :  { %s1529_s0 = inlined_call_operand.hbm [shape: f32[9,1024], index: 0, kind: input, shape index: {}]   ;;  %s1530_s1 = inlined_call_operand.vmem [shape: f32[32,9], index: 1, kind: input, shape index: {}]   ;;  %s1531_s2 = inlined_call_operand.vmem [shape: f32[32,1], index: 2, kind: input, shape index: {}]   ;;  %s1532_s3 = inlined_call_operand.vmem [shape: f32[8,32], index: 3, kind: input, shape index: {}]   ;;  %s1533_s4 = inlined_call_operand.vmem [shape: f32[8,1], index: 4, kind: input, shape index: {}]   ;;  %s1534_s5 = inlined_call_operand.vmem [shape: f32[1,8], index: 5, kind: input, shape index: {}]   ;;  %s1535_s6 = inlined_call_operand.<no memory space> [shape: f32[1,1], index: 6, kind: input, shape index: {}]   ;;  %s1536_s7 = inlined_call_operand.hbm [shape: f32[1,1024], index: 7, kind: output, shape index: {}]  }
   0x1   :  { %v12_v0 = vstv %s1535_s6 }
   0x2   :  { %13 = vst [vmem:[#allocation2] sm:$0x1] %v12_v0 }
   0x3   :  { %14 = vsyncpa [#allocation4], 0 }
   0x4   :  { %15 = vsyncpa [#allocation5], 0  ;;  %s20_s28 = sshll.u32 %s1529_s0, 4  ;;  %s1297_s29 = smov [#allocation3]   ;;  %s21_s28 = int_to_ptr.hbm [resolvable:$true] %s20_s28 }
   0x5   :  { %s22_s30 = sshll.u32 %s1297_s29, 4  ;;  %s1298_s8 = smov 1024   ;;  %s23_s30 = int_to_ptr.vmem [resolvable:$true] %s22_s30 }
   0x6   :  { %s1299_s9 = smov 64  }
   0x7   :  { %28 = dma.hbm_to_vmem [thread:$0]  %s21_s28, 2048, %s23_s30, [#allocation4], %s1298_s8, %s1298_s8, %s1299_s9  }
   0x8   :  { %1293 = dma.done.wait [#allocation4], 2048  }
   0x9   :  { %1294 = vsyncadd [#allocation4], 4294965248  ;;  %v1300_v1 = vmov 0   ;;  %vm102_vm0 = vcmask 1040384   ;;  %v53_v2 = vld [vmem:[#allocation3 + $0x40] sm:$0x1] }
   0xa   :  { %1051 = vset.pattern.permute.xlu1 %v1300_v1  ;;  %1050 = vset.pattern.permute.xlu0 %v1300_v1  ;;  %v54_v3 = vld [vmem:[#allocation3 + $0x48] sm:$0x1]  ;;  %v55_v4 = vld [vmem:[#allocation3 + $0x50] sm:$0x1]  ;;  %v56_v5 = vld [vmem:[#allocation3 + $0x58] sm:$0x1] }
   0xb   :  { %1052 = vset.pattern.permute.xlu2 %v1300_v1  ;;  %989 = vmatpush.msk.msra.mxu0 %vm102_vm0, %v53_v2  ;;  %v45_v6 = vld [vmem:[#allocation3] sm:$0xff]  ;;  %v46_v7 = vld [vmem:[#allocation3 + $0x8] sm:$0xff]  ;;  %v47_v8 = vld [vmem:[#allocation3 + $0x10] sm:$0xff]  ;;  %vm89_vm1 = vcmask 72704   ;;  %vm526_vm2 = vcmask 261120   ;;  %vm738_vm3 = vcmask 64512  }
   0xc   :  { %994 = vmatpush.msk.msra.mxu1 %vm102_vm0, %v54_v3  ;;  %999 = vmatpush.msk.msra.mxu2 %vm102_vm0, %v55_v4  ;;  %v48_v9 = vld [vmem:[#allocation3 + $0x18] sm:$0xff]  ;;  %v59_v11 = vld [vmem:[#allocation3 + $0x70] sm:$0x1]  ;;  %v66_v13 = vld [vmem:[%s1531_s2 + $0x8] sm:$0xff]  ;;  %vm958_vm4 = vcmask 1042434   ;;  %vm962_vm5 = vcmask 1044484  }
   0xd   :  { %1004 = vmatpush.msk.msra.mxu3 %vm102_vm0, %v56_v5  ;;  %v61_v10 = vld [vmem:[%s1530_s1] sm:$0xff]  ;;  %142 = vmatpush.msra.mxu0 %v45_v6  ;;  %v60_v12 = vld [vmem:[#allocation3 + $0x78] sm:$0x1]  ;;  %v51_v14 = vld [vmem:[#allocation3 + $0x30] sm:$0xff]  ;;  %vm964_vm6 = vcmask 1046534   ;;  %vm960_vm7 = vcmask 1041408  }
   0xe   :  { %171 = vmatpush.msra.mxu1 %v46_v7  ;;  %200 = vmatpush.msra.mxu2 %v47_v8  ;;  %v52_v15 = vld [vmem:[#allocation3 + $0x38] sm:$0xff]  ;;  %v57_v17 = vld [vmem:[#allocation3 + $0x60] sm:$0x1]  ;;  %v58_v18 = vld [vmem:[#allocation3 + $0x68] sm:$0x1]  ;;  %vm966_vm8 = vcmask 1045508  }
   0xf   :  { %229 = vmatpush.msra.mxu3 %v48_v9  ;;  %990 = vmatmul.msk.f32.vlgmr.msra.gmra.mxu0 %vm89_vm1, %v61_v10  ;;  %v68_v16 = vld [vmem:[%s1531_s2 + $0x18] sm:$0xff]  ;;  %v49_v19 = vld [vmem:[#allocation3 + $0x20] sm:$0xff]  ;;  %v50_v20 = vld [vmem:[#allocation3 + $0x28] sm:$0xff]  ;;  %s979_s29 = sshll.u32 %s1536_s7, 4  ;;  %vm968_vm9 = vcmask 1043456   ;;  %s980_s29 = int_to_ptr.hbm [resolvable:$true] %s979_s29 }
  0x10   :  { %995 = vmatmul.msk.f32.vlgmr.msra.gmra.mxu1 %vm89_vm1, %v61_v10  ;;  %1000 = vmatmul.msk.f32.vlgmr.msra.gmra.mxu2 %vm89_vm1, %v61_v10  ;;  %v62_v21 = vld [vmem:[%s1530_s1 + $0x8] sm:$0xff]  ;;  %v65_v22 = vld [vmem:[%s1531_s2] sm:$0xff]  ;;  %v67_v23 = vld [vmem:[%s1531_s2 + $0x10] sm:$0xff] }
  0x11   :  { %1005 = vmatmul.msk.f32.vlgmr.msra.gmra.mxu3 %vm89_vm1, %v61_v10  ;;  %1019 = vmatpush.msk.msrb.mxu2 %vm102_vm0, %v59_v11  ;;  %v63_v24 = vld [vmem:[%s1530_s1 + $0x10] sm:$0xff]  ;;  %v64_v25 = vld [vmem:[%s1530_s1 + $0x18] sm:$0xff] }
  0x12   :  { %1024 = vmatpush.msk.msrb.mxu3 %vm102_vm0, %v60_v12  ;;  %76 = vperm.xlu1 %1051, %v66_v13  }
  0x13   :  { %86 = vperm.xlu0 %1050, %v68_v16   ;;  %316 = vmatpush.msrb.mxu2 %v51_v14 }
  0x14   :  { %345 = vmatpush.msrb.mxu3 %v52_v15  ;;  %1009 = vmatpush.msk.msrb.mxu0 %vm102_vm0, %v57_v17 }
  0x15   :  { %1014 = vmatpush.msk.msrb.mxu1 %vm102_vm0, %v58_v18 }
  0x16   :  { %258 = vmatpush.msrb.mxu0 %v49_v19 }
  0x17   :  { %287 = vmatpush.msrb.mxu1 %v50_v20  ;;  %991 = vmatmul.msk.f32.gmra.mxu0 %vm89_vm1, %v62_v21 }
  0x18   :  { %996 = vmatmul.msk.f32.gmra.mxu1 %vm89_vm1, %v62_v21  ;;  %1001 = vmatmul.msk.f32.gmra.mxu2 %vm89_vm1, %v62_v21 }
  0x19   :  { %1006 = vmatmul.msk.f32.gmra.mxu3 %vm89_vm1, %v62_v21 }
  0x1a   :  { %71 = vperm.xlu1 %1051, %v65_v22  }
  0x1b   :  { %81 = vperm.xlu0 %1050, %v67_v23  }
  0x1f   :  { %992 = vmatmul.msk.f32.gmra.mxu0 %vm89_vm1, %v63_v24 }
  0x20   :  { %997 = vmatmul.msk.f32.gmra.mxu1 %vm89_vm1, %v63_v24  ;;  %1002 = vmatmul.msk.f32.gmra.mxu2 %vm89_vm1, %v63_v24 }
  0x21   :  { %1007 = vmatmul.msk.f32.gmra.mxu3 %vm89_vm1, %v63_v24 }
  0x27   :  { %993 = vmatmul.msk.f32.gmra.mxu0 %vm89_vm1, %v64_v25 }
  0x28   :  { %998 = vmatmul.msk.f32.gmra.mxu1 %vm89_vm1, %v64_v25  ;;  %1003 = vmatmul.msk.f32.gmra.mxu2 %vm89_vm1, %v64_v25 }
  0x29   :  { %1008 = vmatmul.msk.f32.gmra.mxu3 %vm89_vm1, %v64_v25 }
  0x2f   :  { %1010 = vmatmul.msk.f32.vlgmr.msrb.gmra.mxu0 %vm89_vm1, %v61_v10 }
  0x30   :  { %1015 = vmatmul.msk.f32.vlgmr.msrb.gmra.mxu1 %vm89_vm1, %v61_v10  ;;  %1020 = vmatmul.msk.f32.vlgmr.msrb.gmra.mxu2 %vm89_vm1, %v61_v10 }
  0x31   :  { %1025 = vmatmul.msk.f32.vlgmr.msrb.gmra.mxu3 %vm89_vm1, %v61_v10 }
  0x37   :  { %1011 = vmatmul.msk.f32.gmra.mxu0 %vm89_vm1, %v62_v21 }
  0x38   :  { %1016 = vmatmul.msk.f32.gmra.mxu1 %vm89_vm1, %v62_v21  ;;  %1021 = vmatmul.msk.f32.gmra.mxu2 %vm89_vm1, %v62_v21 }
  0x39   :  { %1026 = vmatmul.msk.f32.gmra.mxu3 %vm89_vm1, %v62_v21 }
  0x3f   :  { %1012 = vmatmul.msk.f32.gmra.mxu0 %vm89_vm1, %v63_v24 }
  0x40   :  { %1017 = vmatmul.msk.f32.gmra.mxu1 %vm89_vm1, %v63_v24  ;;  %1022 = vmatmul.msk.f32.gmra.mxu2 %vm89_vm1, %v63_v24 }
  0x41   :  { %1027 = vmatmul.msk.f32.gmra.mxu3 %vm89_vm1, %v63_v24 }
  0x47   :  { %1013 = vmatmul.msk.f32.gmra.mxu0 %vm89_vm1, %v64_v25 }
  0x48   :  { %1018 = vmatmul.msk.f32.gmra.mxu1 %vm89_vm1, %v64_v25  ;;  %1023 = vmatmul.msk.f32.gmra.mxu2 %vm89_vm1, %v64_v25 }
  0x49   :  { %1028 = vmatmul.msk.f32.gmra.mxu3 %vm89_vm1, %v64_v25 }
  0x84   :  { %v1412_v26 = vpop.permute.xlu1 %76 }
  0x85   :  { %v1414_v29 = vpop.permute.xlu0 %86 }
  0x8c   :  { %v144_v27 = vpop.f32.mrf.mxu0  ;;  %v1416_v34 = vpop.permute.xlu1 %71 }
  0x8d   :  { %v173_v28 = vpop.f32.mrf.mxu1  ;;  %v145_v35 = vadd.f32 %v144_v27, %v1416_v34  ;;  %v1421_v38 = vpop.permute.xlu0 %81 }
  0x8e   :  { %v174_v36 = vadd.f32 %v173_v28, %v1416_v34 }
  0x8f   :  { %v359_v39 = vsub.f32 0.0, %v145_v35 }
  0x90   :  { %v360_v42 = vsub.f32 0.0, %v174_v36 }
  0x91   :  { %v391_v50 = vmul.f32 1.442695, %v359_v39 }
  0x92   :  { %v393_v51 = vmul.f32 1.442695, %v360_v42 }
  0x93   :  { %v202_v30 = vpop.f32.mrf.mxu2  ;;  %1053 = vpow2.f32 %v391_v50 }
  0x94   :  { %v231_v31 = vpop.f32.mrf.mxu3  ;;  %v147_v32 = vpop.f32.mrf.mxu0  ;;  %v203_v37 = vadd.f32 %v202_v30, %v1416_v34  ;;  %1055 = vpow2.f32 %v393_v51 }
  0x95   :  { %v176_v33 = vpop.f32.mrf.mxu1  ;;  %v232_v45 = vadd.f32 %v231_v31, %v1416_v34  ;;  %v148_v48 = vadd.f32 %v147_v32, %v1412_v26 }
  0x96   :  { %v361_v47 = vsub.f32 0.0, %v203_v37  ;;  %v177_v49 = vadd.f32 %v176_v33, %v1412_v26 }
  0x97   :  { %v362_v54 = vsub.f32 0.0, %v232_v45  ;;  %v367_v56 = vsub.f32 0.0, %v148_v48 }
  0x98   :  { %v395_v55 = vmul.f32 1.442695, %v361_v47  ;;  %v368_v57 = vsub.f32 0.0, %v177_v49 }
  0x99   :  { %v397_v2 = vmul.f32 1.442695, %v362_v54  ;;  %v407_v6 = vmul.f32 1.442695, %v367_v56  ;;  %v1054_v14 = vpop.eup %1053 }
  0x9a   :  { %1057 = vpow2.f32 %v395_v55  ;;  %v409_v7 = vmul.f32 1.442695, %v368_v57  ;;  %v1434_v17 = vpop.eup %1055 }
  0x9b   :  { %v205_v40 = vpop.f32.mrf.mxu2 }
  0x9c   :  { %v234_v41 = vpop.f32.mrf.mxu3  ;;  %v150_v43 = vpop.f32.mrf.mxu0  ;;  %v206_v52 = vadd.f32 %v205_v40, %v1412_v26 }
  0x9d   :  { %v179_v44 = vpop.f32.mrf.mxu1  ;;  %v151_v46 = vadd.f32 %v150_v43, %v1421_v38  ;;  %v235_v58 = vadd.f32 %v234_v41, %v1412_v26 }
  0x9e   :  { %v369_v61 = vsub.f32 0.0, %v206_v52  ;;  %v180_v9 = vadd.f32 %v179_v44, %v1421_v38  ;;  %v455_v52 = vadd.f32 1.0, %v1054_v14 }
  0x9f   :  { %v375_v53 = vsub.f32 0.0, %v151_v46  ;;  %v370_v8 = vsub.f32 0.0, %v235_v58 }
  0xa0   :  { %v411_v12 = vmul.f32 1.442695, %v369_v61  ;;  %v376_v20 = vsub.f32 0.0, %v180_v9  ;;  %v1058_v23 = vpop.eup %1057 }
  0xa1   :  { %v423_v62 = vmul.f32 1.442695, %v375_v53  ;;  %v413_v19 = vmul.f32 1.442695, %v370_v8  ;;  %v457_v54 = vadd.f32 1.0, %v1058_v23 }
  0xa2   :  { %v425_v37 = vmul.f32 1.442695, %v376_v20 }
  0xa3   :  { %v208_v59 = vpop.f32.mrf.mxu2  ;;  %1059 = vpow2.f32 %v423_v62 }
  0xa4   :  { %v237_v60 = vpop.f32.mrf.mxu3  ;;  %v209_v63 = vadd.f32 %v208_v59, %v1421_v38  ;;  %v153_v0 = vpop.f32.mrf.mxu0  ;;  %1061 = vpow2.f32 %v397_v2 }
  0xa5   :  { %v182_v1 = vpop.f32.mrf.mxu1  ;;  %v238_v3 = vadd.f32 %v237_v60, %v1421_v38  ;;  %v154_v4 = vadd.f32 %v153_v0, %v1414_v29  ;;  %1063 = vpow2.f32 %v407_v6 }
  0xa6   :  { %v183_v5 = vadd.f32 %v182_v1, %v1414_v29  ;;  %v377_v13 = vsub.f32 0.0, %v209_v63  ;;  %1065 = vpow2.f32 %v409_v7 }
  0xa7   :  { %v383_v10 = vsub.f32 0.0, %v154_v4  ;;  %v378_v15 = vsub.f32 0.0, %v238_v3  ;;  %1067 = vpow2.f32 %v411_v12 }
  0xa8   :  { %v384_v11 = vsub.f32 0.0, %v183_v5  ;;  %v427_v24 = vmul.f32 1.442695, %v377_v13 }
  0xa9   :  { %v439_v16 = vmul.f32 1.442695, %v383_v10  ;;  %v429_v31 = vmul.f32 1.442695, %v378_v15  ;;  %v1060_v32 = vpop.eup %1059 }
  0xaa   :  { %v441_v18 = vmul.f32 1.442695, %v384_v11  ;;  %v1438_v36 = vpop.eup %1061  ;;  %v471_v43 = vadd.f32 1.0, %v1060_v32  ;;  %v1458_v32 = vld [vmem:[%s1532_s3] sm:$0xff] }
  0xab   :  { %v211_v21 = vpop.f32.mrf.mxu2  ;;  %1069 = vpow2.f32 %v439_v16  ;;  %v1064_v39 = vpop.eup %1063 }
  0xac   :  { %v240_v22 = vpop.f32.mrf.mxu3  ;;  %v212_v25 = vadd.f32 %v211_v21, %v1414_v29  ;;  %v260_v28 = vpop.f32.mrf.mxu0  ;;  %1071 = vpow2.f32 %v441_v18  ;;  %v463_v57 = vadd.f32 1.0, %v1064_v39 }
  0xad   :  { %v241_v27 = vadd.f32 %v240_v22, %v1414_v29  ;;  %v289_v30 = vpop.f32.mrf.mxu1  ;;  %1073 = vpow2.f32 %v413_v19  ;;  %v1066_v42 = vpop.eup %1065  ;;  %v261_v1 = vadd.f32 %v260_v28, %v1416_v34  ;;  %v458_v22 = vadd.f32 1.0, %v1438_v36 }
  0xae   :  { %v385_v33 = vsub.f32 0.0, %v212_v25  ;;  %1075 = vpow2.f32 %v427_v24  ;;  %v1068_v44 = vpop.eup %1067  ;;  %v290_v5 = vadd.f32 %v289_v30, %v1416_v34  ;;  %v464_v18 = vadd.f32 1.0, %v1066_v42 }
  0xaf   :  { %v386_v35 = vsub.f32 0.0, %v241_v27  ;;  %1077 = vpow2.f32 %v429_v31  ;;  %v465_v60 = vadd.f32 1.0, %v1068_v44  ;;  %v363_v19 = vsub.f32 0.0, %v261_v1 }
  0xb0   :  { %v443_v40 = vmul.f32 1.442695, %v385_v33  ;;  %v364_v23 = vsub.f32 0.0, %v290_v5  ;;  %v456_v28 = vadd.f32 1.0, %v1434_v17 }
  0xb1   :  { %v445_v41 = vmul.f32 1.442695, %v386_v35  ;;  %v1070_v45 = vpop.eup %1069  ;;  %v399_v35 = vmul.f32 1.442695, %v363_v19 }
  0xb2   :  { %1079 = vpow2.f32 %v443_v40  ;;  %v1072_v48 = vpop.eup %1071  ;;  %v479_v49 = vadd.f32 1.0, %v1070_v45  ;;  %v401_v39 = vmul.f32 1.442695, %v364_v23 }
  0xb3   :  { %1081 = vpow2.f32 %v425_v37  ;;  %v318_v46 = vpop.f32.mrf.mxu2  ;;  %v1074_v53 = vpop.eup %1073  ;;  %v480_v55 = vadd.f32 1.0, %v1072_v48 }
  0xb4   :  { %v347_v47 = vpop.f32.mrf.mxu3  ;;  %1083 = vpow2.f32 %v445_v41  ;;  %v263_v50 = vpop.f32.mrf.mxu0  ;;  %v319_v9 = vadd.f32 %v318_v46, %v1416_v34  ;;  %v466_v14 = vadd.f32 1.0, %v1074_v53 }
  0xb5   :  { %v1440_v51 = vpop.f32.mrf.mxu1  ;;  %1085 = vrcp.f32 %v471_v43  ;;  %v1076_v56 = vpop.eup %1075  ;;  %v348_v20 = vadd.f32 %v347_v47, %v1416_v34  ;;  %v264_v24 = vadd.f32 %v263_v50, %v1412_v26 }
  0xb6   :  { %1087 = vrcp.f32 %v479_v49  ;;  %v1078_v58 = vpop.eup %1077  ;;  %v473_v0 = vadd.f32 1.0, %v1076_v56  ;;  %v365_v27 = vsub.f32 0.0, %v319_v9  ;;  %v293_v37 = vadd.f32 %v1440_v51, %v1412_v26 }
  0xb7   :  { %1089 = vrcp.f32 %v480_v55  ;;  %v474_v3 = vadd.f32 1.0, %v1078_v58  ;;  %v366_v36 = vsub.f32 0.0, %v348_v20  ;;  %v371_v40 = vsub.f32 0.0, %v264_v24 }
  0xb8   :  { %v1080_v59 = vpop.eup %1079  ;;  %1091 = vrcp.f32 %v455_v52  ;;  %v403_v44 = vmul.f32 1.442695, %v365_v27  ;;  %v372_v55 = vsub.f32 0.0, %v293_v37 }
  0xb9   :  { %v1082_v61 = vpop.eup %1081  ;;  %1093 = vrcp.f32 %v457_v54  ;;  %v481_v62 = vadd.f32 1.0, %v1080_v59  ;;  %v405_v54 = vmul.f32 1.442695, %v366_v36  ;;  %v415_v58 = vmul.f32 1.442695, %v371_v40 }
  0xba   :  { %v1084_v63 = vpop.eup %1083  ;;  %1095 = vrcp.f32 %v463_v57  ;;  %v472_v12 = vadd.f32 1.0, %v1082_v61  ;;  %v417_v5 = vmul.f32 1.442695, %v372_v55 }
  0xbb   :  { %v1086_v2 = vpop.eup %1085  ;;  %1097 = vrcp.f32 %v481_v62  ;;  %v482_v4 = vadd.f32 1.0, %v1084_v63  ;;  %v321_v6 = vpop.f32.mrf.mxu2 }
  0xbc   :  { %v1444_v7 = vpop.f32.mrf.mxu3  ;;  %v1088_v8 = vpop.eup %1087  ;;  %1099 = vrcp.f32 %v465_v60  ;;  %v322_v45 = vadd.f32 %v321_v6, %v1412_v26 }
  0xbd   :  { %v266_v10 = vpop.f32.mrf.mxu0  ;;  %v295_v11 = vpop.f32.mrf.mxu1  ;;  %1101 = vrcp.f32 %v482_v4  ;;  %542 = vmatpush.msra.mxu0 %v1088_v8  ;;  %v351_v56 = vadd.f32 %v1444_v7, %v1412_v26 }
  0xbe   :  { %v1090_v13 = vpop.eup %1089  ;;  %v267_v15 = vadd.f32 %v266_v10, %v1421_v38  ;;  %1103 = vrcp.f32 %v473_v0  ;;  %v296_v34 = vadd.f32 %v295_v11, %v1421_v38  ;;  %v373_v1 = vsub.f32 0.0, %v322_v45 }
  0xbf   :  { %v1092_v16 = vpop.eup %1091  ;;  %562 = vmatpush.msra.mxu1 %v1090_v13  ;;  %1105 = vrcp.f32 %v474_v3  ;;  %543 = vmatpush.msra.mxu0 %v1086_v2  ;;  %v374_v3 = vsub.f32 0.0, %v351_v56 }
  0xc0   :  { %v1449_v21 = vpop.eup %1093  ;;  %1107 = vrcp.f32 %v472_v12  ;;  %v379_v31 = vsub.f32 0.0, %v267_v15  ;;  %v380_v50 = vsub.f32 0.0, %v296_v34  ;;  %v419_v15 = vmul.f32 1.442695, %v373_v1 }
  0xc1   :  { %v1096_v25 = vpop.eup %1095  ;;  %1109 = vrcp.f32 %v466_v14 }
  0xc2   :  { %v1098_v30 = vpop.eup %1097  ;;  %544 = vmatpush.msra.mxu0 %v1096_v25  ;;  %1111 = vrcp.f32 %v464_v18  ;;  %v431_v49 = vmul.f32 1.442695, %v379_v31  ;;  %v433_v2 = vmul.f32 1.442695, %v380_v50  ;;  %v421_v18 = vmul.f32 1.442695, %v374_v3 }
  0xc3   :  { %v1100_v33 = vpop.eup %1099  ;;  %582 = vmatpush.msra.mxu2 %v1098_v30  ;;  %1113 = vrcp.f32 %v458_v22  ;;  %v324_v41 = vpop.f32.mrf.mxu2 }
  0xc4   :  { %v1102_v17 = vpop.eup %1101  ;;  %545 = vmatpush.msra.mxu0 %v1092_v16  ;;  %v353_v42 = vpop.f32.mrf.mxu3  ;;  %1115 = vrcp.f32 %v456_v28  ;;  %v325_v59 = vadd.f32 %v324_v41, %v1421_v38 }
  0xc5   :  { %v1104_v43 = vpop.eup %1103  ;;  %602 = vmatpush.msra.mxu3 %v1102_v17  ;;  %1029 = vmatmul.msk.f32.vlgmr.msra.gmra.mxu0 %vm526_vm2, %v1458_v32  ;;  %v269_v46 = vpop.f32.mrf.mxu0  ;;  %1117 = vpow2.f32 %v399_v35  ;;  %v354_v62 = vadd.f32 %v353_v42, %v1421_v38  ;;  %v520_v38 = vld [vmem:[%s1533_s4] sm:$0xff] }
  0xc6   :  { %v298_v47 = vpop.f32.mrf.mxu1  ;;  %v1106_v48 = vpop.eup %1105  ;;  %583 = vmatpush.msra.mxu2 %v1104_v43  ;;  %v270_v51 = vadd.f32 %v269_v46, %v1414_v29  ;;  %1119 = vpow2.f32 %v401_v39  ;;  %v381_v6 = vsub.f32 0.0, %v325_v59  ;;  %523 = vperm.xlu2 %1052, %v520_v38  }
  0xc7   :  { %v299_v52 = vadd.f32 %v298_v47, %v1414_v29  ;;  %v1108_v53 = vpop.eup %1107  ;;  %603 = vmatpush.msra.mxu3 %v1106_v48  ;;  %1121 = vpow2.f32 %v403_v44  ;;  %v382_v10 = vsub.f32 0.0, %v354_v62 }
  0xc8   :  { %v1110_v57 = vpop.eup %1109  ;;  %563 = vmatpush.msra.mxu1 %v1108_v53  ;;  %v387_v60 = vsub.f32 0.0, %v270_v51  ;;  %584 = vmatpush.msra.mxu2 %v1100_v33  ;;  %1123 = vpow2.f32 %v431_v49 }
  0xc9   :  { %v1112_v61 = vpop.eup %1111  ;;  %v388_v63 = vsub.f32 0.0, %v299_v52  ;;  %604 = vmatpush.msra.mxu3 %v1110_v57  ;;  %1125 = vpow2.f32 %v405_v54  ;;  %v437_v23 = vmul.f32 1.442695, %v382_v10 }
  0xca   :  { %v1114_v0 = vpop.eup %1113  ;;  %564 = vmatpush.msra.mxu1 %v1112_v61  ;;  %585 = vmatpush.msra.mxu2 %v1449_v21  ;;  %v447_v4 = vmul.f32 1.442695, %v387_v60  ;;  %1127 = vpow2.f32 %v415_v58  ;;  %v435_v21 = vmul.f32 1.442695, %v381_v6 }
  0xcb   :  { %v1116_v26 = vpop.eup %1115  ;;  %605 = vmatpush.msra.mxu3 %v1114_v0  ;;  %1031 = vmatmul.msk.f32.vlgmr.msra.gmra.mxu2 %vm526_vm2, %v1458_v32  ;;  %v327_v7 = vpop.f32.mrf.mxu2  ;;  %v449_v11 = vmul.f32 1.442695, %v388_v63  ;;  %1129 = vpow2.f32 %v433_v2 }
  0xcc   :  { %565 = vmatpush.msra.mxu1 %v1116_v26  ;;  %1032 = vmatmul.msk.f32.vlgmr.msra.gmra.mxu3 %vm526_vm2, %v1458_v32  ;;  %v356_v8 = vpop.f32.mrf.mxu3  ;;  %v1118_v9 = vpop.eup %1117  ;;  %v328_v12 = vadd.f32 %v327_v7, %v1414_v29  ;;  %1131 = vpow2.f32 %v447_v4 }
  0xcd   :  { %1030 = vmatmul.msk.f32.vlgmr.msra.gmra.mxu1 %vm526_vm2, %v1458_v32  ;;  %v357_v13 = vadd.f32 %v356_v8, %v1414_v29  ;;  %v1120_v14 = vpop.eup %1119  ;;  %1133 = vpow2.f32 %v417_v5  ;;  %v731_v29 = vld [vmem:[#allocation2] sm:$0x1]  ;;  %v459_v42 = vadd.f32 1.0, %v1118_v9 }
  0xce   :  { %v1122_v16 = vpop.eup %1121  ;;  %v389_v19 = vsub.f32 0.0, %v328_v12  ;;  %1135 = vpow2.f32 %v449_v11  ;;  %734 = vperm.xlu2 %1052, %v731_v29   ;;  %v460_v46 = vadd.f32 1.0, %v1120_v14  ;;  %v1503_v29 = vld [vmem:[%s1534_s5] sm:$0x1]  ;;  %s1301_s5 = smov [#allocation6]  }
  0xcf   :  { %v1124_v20 = vpop.eup %1123  ;;  %v390_v24 = vsub.f32 0.0, %v357_v13  ;;  %1137 = vpow2.f32 %v419_v15  ;;  %v461_v58 = vadd.f32 1.0, %v1122_v16  ;;  %s977_s26 = sshll.u32 %s1301_s5, 4  ;;  %s978_s26 = int_to_ptr.vmem [resolvable:$true] %s977_s26 }
  0xd0   :  { %v1483_v22 = vpop.eup %1125  ;;  %v475_v27 = vadd.f32 1.0, %v1124_v20  ;;  %1139 = vpow2.f32 %v421_v18  ;;  %v451_v28 = vmul.f32 1.442695, %v389_v19 }
  0xd1   :  { %v1128_v25 = vpop.eup %1127  ;;  %1141 = vpow2.f32 %v435_v21  ;;  %v453_v34 = vmul.f32 1.442695, %v390_v24  ;;  %v462_v63 = vadd.f32 1.0, %v1483_v22 }
  0xd2   :  { %v1130_v30 = vpop.eup %1129  ;;  %1143 = vpow2.f32 %v437_v23  ;;  %v467_v37 = vadd.f32 1.0, %v1128_v25 }
  0xd3   :  { %v1132_v31 = vpop.eup %1131  ;;  %1145 = vrcp.f32 %v475_v27  ;;  %v476_v39 = vadd.f32 1.0, %v1130_v30 }
  0xd4   :  { %v1134_v33 = vpop.eup %1133  ;;  %v483_v35 = vadd.f32 1.0, %v1132_v31  ;;  %1147 = vpow2.f32 %v451_v28 }
  0xd5   :  { %v1136_v36 = vpop.eup %1135  ;;  %v468_v44 = vadd.f32 1.0, %v1134_v33 }
  0xd6   :  { %v1138_v17 = vpop.eup %1137  ;;  %1149 = vrcp.f32 %v483_v35  ;;  %v484_v40 = vadd.f32 1.0, %v1136_v36 }
  0xd7   :  { %v1140_v41 = vpop.eup %1139  ;;  %1151 = vpow2.f32 %v453_v34  ;;  %v469_v53 = vadd.f32 1.0, %v1138_v17 }
  0xd8   :  { %v1142_v43 = vpop.eup %1141  ;;  %1153 = vrcp.f32 %v484_v40  ;;  %v470_v60 = vadd.f32 1.0, %v1140_v41 }
  0xd9   :  { %v1144_v45 = vpop.eup %1143  ;;  %1155 = vrcp.f32 %v467_v37  ;;  %v477_v49 = vadd.f32 1.0, %v1142_v43 }
  0xda   :  { %v1146_v47 = vpop.eup %1145  ;;  %1157 = vrcp.f32 %v476_v39  ;;  %v478_v55 = vadd.f32 1.0, %v1144_v45 }
  0xdb   :  { %v1148_v48 = vpop.eup %1147  ;;  %1159 = vrcp.f32 %v459_v42 }
  0xdc   :  { %v1150_v50 = vpop.eup %1149  ;;  %1161 = vrcp.f32 %v468_v44  ;;  %v485_v51 = vadd.f32 1.0, %v1148_v48 }
  0xdd   :  { %v1152_v52 = vpop.eup %1151  ;;  %1163 = vrcp.f32 %v460_v46  ;;  %622 = vmatpush.msrb.mxu0 %v1150_v50 }
  0xde   :  { %v1154_v54 = vpop.eup %1153  ;;  %1165 = vrcp.f32 %v485_v51  ;;  %v486_v56 = vadd.f32 1.0, %v1152_v52 }
  0xdf   :  { %v1156_v57 = vpop.eup %1155  ;;  %1167 = vrcp.f32 %v477_v49  ;;  %642 = vmatpush.msrb.mxu1 %v1154_v54  ;;  %623 = vmatpush.msrb.mxu0 %v1146_v47 }
  0xe0   :  { %v1158_v59 = vpop.eup %1157  ;;  %1169 = vrcp.f32 %v486_v56 }
  0xe1   :  { %v1160_v61 = vpop.eup %1159  ;;  %1171 = vrcp.f32 %v469_v53  ;;  %643 = vmatpush.msrb.mxu1 %v1158_v59  ;;  %624 = vmatpush.msrb.mxu0 %v1156_v57 }
  0xe2   :  { %v1162_v62 = vpop.eup %1161  ;;  %1173 = vrcp.f32 %v478_v55 }
  0xe3   :  { %v1164_v0 = vpop.eup %1163  ;;  %1175 = vrcp.f32 %v461_v58  ;;  %644 = vmatpush.msrb.mxu1 %v1162_v62  ;;  %625 = vmatpush.msrb.mxu0 %v1160_v61 }
  0xe4   :  { %v1166_v1 = vpop.eup %1165  ;;  %1177 = vrcp.f32 %v470_v60  ;;  %1033 = vmatmul.msk.f32.vlgmr.msrb.gmra.mxu0 %vm526_vm2, %v1458_v32 }
  0xe5   :  { %v1168_v2 = vpop.eup %1167  ;;  %645 = vmatpush.msrb.mxu1 %v1164_v0  ;;  %662 = vmatpush.msrb.mxu2 %v1166_v1  ;;  %1179 = vrcp.f32 %v462_v63 }
  0xe6   :  { %v1170_v26 = vpop.eup %1169  ;;  %1034 = vmatmul.msk.f32.vlgmr.msrb.gmra.mxu1 %vm526_vm2, %v1458_v32 }
  0xe7   :  { %v1172_v3 = vpop.eup %1171  ;;  %682 = vmatpush.msrb.mxu3 %v1170_v26  ;;  %663 = vmatpush.msrb.mxu2 %v1168_v2 }
  0xe8   :  { %v1174_v4 = vpop.eup %1173 }
  0xe9   :  { %v1176_v38 = vpop.eup %1175  ;;  %683 = vmatpush.msrb.mxu3 %v1174_v4  ;;  %664 = vmatpush.msrb.mxu2 %v1172_v3 }
  0xea   :  { %v1178_v5 = vpop.eup %1177 }
  0xeb   :  { %684 = vmatpush.msrb.mxu3 %v1178_v5  ;;  %665 = vmatpush.msrb.mxu2 %v1176_v38  ;;  %v1180_v6 = vpop.eup %1179 }
  0xec   :  { %1035 = vmatmul.msk.f32.vlgmr.msrb.gmra.mxu2 %vm526_vm2, %v1458_v32 }
  0xed   :  { %685 = vmatpush.msrb.mxu3 %v1180_v6 }
  0xee   :  { %1036 = vmatmul.msk.f32.vlgmr.msrb.gmra.mxu3 %vm526_vm2, %v1458_v32 }
 0x120   :  { %v1494_v7 = vpop.permute.xlu2 %523 }
 0x128   :  { %v735_v4 = vpop.permute.xlu2 %734 }
 0x129   :  { %v737_v38 = vperm.slane %v735_v4, 0 }
 0x142   :  { %v547_v8 = vpop.f32.mrf.mxu0 }
 0x143   :  { %v548_v9 = vadd.f32 %v547_v8, %v1494_v7 }
 0x145   :  { %v690_v10 = vsub.f32 0.0, %v548_v9 }
 0x147   :  { %v698_v11 = vmul.f32 1.442695, %v690_v10 }
 0x149   :  { %1181 = vpow2.f32 %v698_v11 }
 0x14a   :  { %v567_v12 = vpop.f32.mrf.mxu1 }
 0x14b   :  { %v568_v13 = vadd.f32 %v567_v12, %v1494_v7 }
 0x14d   :  { %v691_v14 = vsub.f32 0.0, %v568_v13 }
 0x14e   :  { %v587_v15 = vpop.f32.mrf.mxu2 }
 0x14f   :  { %v1182_v16 = vpop.eup %1181  ;;  %v700_v18 = vmul.f32 1.442695, %v691_v14  ;;  %v588_v19 = vadd.f32 %v587_v15, %v1494_v7  ;;  %v607_v20 = vpop.f32.mrf.mxu3 }
 0x150   :  { %v714_v21 = vadd.f32 1.0, %v1182_v16  ;;  %v608_v32 = vadd.f32 %v607_v20, %v1494_v7 }
 0x151   :  { %1183 = vpow2.f32 %v700_v18  ;;  %v692_v22 = vsub.f32 0.0, %v588_v19 }
 0x152   :  { %1185 = vrcp.f32 %v714_v21  ;;  %v693_v23 = vsub.f32 0.0, %v608_v32 }
 0x153   :  { %v702_v24 = vmul.f32 1.442695, %v692_v22 }
 0x154   :  { %v704_v25 = vmul.f32 1.442695, %v693_v23 }
 0x155   :  { %1187 = vpow2.f32 %v702_v24 }
 0x156   :  { %1189 = vpow2.f32 %v704_v25 }
 0x157   :  { %v1184_v27 = vpop.eup %1183 }
 0x158   :  { %v1186_v28 = vpop.eup %1185  ;;  %v715_v30 = vadd.f32 1.0, %v1184_v27 }
 0x159   :  { %757 = vmatpush.msra.mxu0 %v1186_v28 }
 0x15a   :  { %1191 = vrcp.f32 %v715_v30  ;;  %1037 = vmatmul.msk.f32.vlgmr.msra.gmra.mxu0 %vm738_vm3, %v1503_v29 }
 0x15b   :  { %v1188_v31 = vpop.eup %1187 }
 0x15c   :  { %v1190_v34 = vpop.eup %1189  ;;  %v716_v33 = vadd.f32 1.0, %v1188_v31 }
 0x15d   :  { %v717_v35 = vadd.f32 1.0, %v1190_v34 }
 0x15e   :  { %1193 = vrcp.f32 %v716_v33 }
 0x15f   :  { %1195 = vrcp.f32 %v717_v35 }
 0x160   :  { %v1192_v36 = vpop.eup %1191 }
 0x161   :  { %777 = vmatpush.msra.mxu1 %v1192_v36  ;;  %v627_v37 = vpop.f32.mrf.mxu0 }
 0x162   :  { %1038 = vmatmul.msk.f32.vlgmr.msra.gmra.mxu1 %vm738_vm3, %v1503_v29  ;;  %v628_v39 = vadd.f32 %v627_v37, %v1494_v7 }
 0x163   :  { %v647_v41 = vpop.f32.mrf.mxu1 }
 0x164   :  { %v1194_v17 = vpop.eup %1193  ;;  %v694_v42 = vsub.f32 0.0, %v628_v39  ;;  %v648_v43 = vadd.f32 %v647_v41, %v1494_v7 }
 0x165   :  { %v1196_v40 = vpop.eup %1195  ;;  %797 = vmatpush.msra.mxu2 %v1194_v17 }
 0x166   :  { %817 = vmatpush.msra.mxu3 %v1196_v40  ;;  %1039 = vmatmul.msk.f32.vlgmr.msra.gmra.mxu2 %vm738_vm3, %v1503_v29  ;;  %v706_v44 = vmul.f32 1.442695, %v694_v42  ;;  %v695_v45 = vsub.f32 0.0, %v648_v43 }
 0x167   :  { %1040 = vmatmul.msk.f32.vlgmr.msra.gmra.mxu3 %vm738_vm3, %v1503_v29 }
 0x168   :  { %1197 = vpow2.f32 %v706_v44  ;;  %v708_v46 = vmul.f32 1.442695, %v695_v45 }
 0x16a   :  { %1199 = vpow2.f32 %v708_v46 }
 0x16e   :  { %v1198_v47 = vpop.eup %1197 }
 0x16f   :  { %v718_v48 = vadd.f32 1.0, %v1198_v47  ;;  %v667_v49 = vpop.f32.mrf.mxu2 }
 0x170   :  { %v1200_v50 = vpop.eup %1199  ;;  %v668_v51 = vadd.f32 %v667_v49, %v1494_v7 }
 0x171   :  { %1201 = vrcp.f32 %v718_v48  ;;  %v719_v52 = vadd.f32 1.0, %v1200_v50  ;;  %v687_v53 = vpop.f32.mrf.mxu3 }
 0x172   :  { %v696_v54 = vsub.f32 0.0, %v668_v51  ;;  %v688_v55 = vadd.f32 %v687_v53, %v1494_v7 }
 0x173   :  { %1203 = vrcp.f32 %v719_v52 }
 0x174   :  { %v710_v56 = vmul.f32 1.442695, %v696_v54  ;;  %v697_v57 = vsub.f32 0.0, %v688_v55 }
 0x176   :  { %1205 = vpow2.f32 %v710_v56  ;;  %v712_v58 = vmul.f32 1.442695, %v697_v57 }
 0x177   :  { %v1202_v59 = vpop.eup %1201 }
 0x178   :  { %1207 = vpow2.f32 %v712_v58  ;;  %837 = vmatpush.msrb.mxu0 %v1202_v59 }
 0x179   :  { %v1204_v60 = vpop.eup %1203  ;;  %1041 = vmatmul.msk.f32.vlgmr.msrb.gmra.mxu0 %vm738_vm3, %v1503_v29 }
 0x17a   :  { %857 = vmatpush.msrb.mxu1 %v1204_v60 }
 0x17b   :  { %1042 = vmatmul.msk.f32.vlgmr.msrb.gmra.mxu1 %vm738_vm3, %v1503_v29 }
 0x17c   :  { %v1206_v61 = vpop.eup %1205 }
 0x17d   :  { %v720_v62 = vadd.f32 1.0, %v1206_v61 }
 0x17e   :  { %v1208_v63 = vpop.eup %1207 }
 0x17f   :  { %1209 = vrcp.f32 %v720_v62  ;;  %v721_v0 = vadd.f32 1.0, %v1208_v63 }
 0x181   :  { %1211 = vrcp.f32 %v721_v0 }
 0x185   :  { %v1210_v1 = vpop.eup %1209 }
 0x186   :  { %877 = vmatpush.msrb.mxu2 %v1210_v1 }
 0x187   :  { %v1212_v2 = vpop.eup %1211  ;;  %1043 = vmatmul.msk.f32.vlgmr.msrb.gmra.mxu2 %vm738_vm3, %v1503_v29 }
 0x188   :  { %897 = vmatpush.msrb.mxu3 %v1212_v2 }
 0x189   :  { %1044 = vmatmul.msk.f32.vlgmr.msrb.gmra.mxu3 %vm738_vm3, %v1503_v29 }
 0x1d7   :  { %v759_v26 = vpop.f32.mrf.mxu0 }
 0x1d8   :  { %v760_v21 = vadd.f32 %v759_v26, %v737_v38 }
 0x1da   :  { %v902_v25 = vsub.f32 0.0, %v760_v21 }
 0x1dc   :  { %v910_v28 = vmul.f32 1.442695, %v902_v25 }
 0x1df   :  { %v779_v3 = vpop.f32.mrf.mxu1 }
 0x1e0   :  { %v780_v7 = vadd.f32 %v779_v3, %v737_v38 }
 0x1e2   :  { %v903_v13 = vsub.f32 0.0, %v780_v7 }
 0x1e4   :  { %v912_v19 = vmul.f32 1.442695, %v903_v13 }
 0x1e6   :  { %1213 = vpow2.f32 %v912_v19 }
 0x1e9   :  { %v799_v5 = vpop.f32.mrf.mxu2 }
 0x1ea   :  { %v819_v6 = vpop.f32.mrf.mxu3  ;;  %v800_v9 = vadd.f32 %v799_v5, %v737_v38 }
 0x1eb   :  { %v820_v11 = vadd.f32 %v819_v6, %v737_v38 }
 0x1ec   :  { %v904_v15 = vsub.f32 0.0, %v800_v9  ;;  %v1214_v31 = vpop.eup %1213 }
 0x1ed   :  { %v905_v16 = vsub.f32 0.0, %v820_v11  ;;  %v927_v40 = vadd.f32 1.0, %v1214_v31 }
 0x1ee   :  { %v914_v32 = vmul.f32 1.442695, %v904_v15 }
 0x1ef   :  { %v916_v22 = vmul.f32 1.442695, %v905_v16 }
 0x1f0   :  { %1215 = vpow2.f32 %v914_v32 }
 0x1f1   :  { %1217 = vpow2.f32 %v916_v22 }
 0x1f6   :  { %v839_v8 = vpop.f32.mrf.mxu0  ;;  %v1216_v35 = vpop.eup %1215 }
 0x1f7   :  { %v840_v12 = vadd.f32 %v839_v8, %v737_v38  ;;  %v1218_v36 = vpop.eup %1217  ;;  %v928_v42 = vadd.f32 1.0, %v1216_v35 }
 0x1f8   :  { %v859_v10 = vpop.f32.mrf.mxu1  ;;  %v929_v44 = vadd.f32 1.0, %v1218_v36 }
 0x1f9   :  { %v860_v14 = vadd.f32 %v859_v10, %v737_v38  ;;  %v906_v18 = vsub.f32 0.0, %v840_v12 }
 0x1fb   :  { %v907_v20 = vsub.f32 0.0, %v860_v14  ;;  %v918_v23 = vmul.f32 1.442695, %v906_v18 }
 0x1fd   :  { %v920_v24 = vmul.f32 1.442695, %v907_v20  ;;  %1219 = vpow2.f32 %v918_v23 }
 0x1ff   :  { %1221 = vpow2.f32 %v920_v24 }
 0x200   :  { %1223 = vpow2.f32 %v910_v28 }
 0x203   :  { %v1220_v39 = vpop.eup %1219 }
 0x204   :  { %v930_v45 = vadd.f32 1.0, %v1220_v39 }
 0x205   :  { %v1222_v41 = vpop.eup %1221 }
 0x206   :  { %v931_v46 = vadd.f32 1.0, %v1222_v41  ;;  %v1224_v47 = vpop.eup %1223 }
 0x207   :  { %v926_v52 = vadd.f32 1.0, %v1224_v47 }
 0x20a   :  { %v879_v27 = vpop.f32.mrf.mxu2 }
 0x20b   :  { %v880_v29 = vadd.f32 %v879_v27, %v737_v38 }
 0x20c   :  { %v899_v30 = vpop.f32.mrf.mxu3 }
 0x20d   :  { %v908_v34 = vsub.f32 0.0, %v880_v29  ;;  %v900_v33 = vadd.f32 %v899_v30, %v737_v38 }
 0x20f   :  { %v922_v37 = vmul.f32 1.442695, %v908_v34  ;;  %v909_v17 = vsub.f32 0.0, %v900_v33 }
 0x211   :  { %1225 = vpow2.f32 %v922_v37  ;;  %v924_v43 = vmul.f32 1.442695, %v909_v17 }
 0x213   :  { %1227 = vpow2.f32 %v924_v43 }
 0x214   :  { %1229 = vrcp.f32 %v927_v40 }
 0x215   :  { %1231 = vrcp.f32 %v928_v42 }
 0x216   :  { %1233 = vrcp.f32 %v929_v44 }
 0x217   :  { %v1226_v48 = vpop.eup %1225  ;;  %1235 = vrcp.f32 %v930_v45 }
 0x218   :  { %1237 = vrcp.f32 %v931_v46  ;;  %v932_v49 = vadd.f32 1.0, %v1226_v48 }
 0x219   :  { %v1228_v50 = vpop.eup %1227 }
 0x21a   :  { %v1230_v51 = vpop.eup %1229  ;;  %1239 = vrcp.f32 %v932_v49  ;;  %v933_v53 = vadd.f32 1.0, %v1228_v50 }
 0x21b   :  { %v1232_v54 = vpop.eup %1231  ;;  %v950_v61 = vrot.slane %v1230_v51, 7 }
 0x21c   :  { %v1234_v55 = vpop.eup %1233  ;;  %1241 = vrcp.f32 %v933_v53  ;;  %v951_v58 = vrot.slane %v1232_v54, 6 }
 0x21d   :  { %v1236_v56 = vpop.eup %1235  ;;  %1243 = vrcp.f32 %v926_v52  ;;  %v952_v59 = vrot.slane %v1234_v55, 5 }
 0x21e   :  { %v1238_v57 = vpop.eup %1237  ;;  %v953_v62 = vrot.slane %v1236_v56, 4 }
 0x21f   :  { %v954_v63 = vrot.slane %v1238_v57, 3  ;;  %v959_v26 = vsel %vm958_vm4, %v951_v58, %v952_v59 }
 0x220   :  { %v1240_v60 = vpop.eup %1239 }
 0x221   :  { %v955_v0 = vrot.slane %v1240_v60, 2  ;;  %v963_v38 = vsel %vm962_vm5, %v953_v62, %v954_v63 }
 0x222   :  { %v1242_v1 = vpop.eup %1241 }
 0x223   :  { %v956_v2 = vrot.slane %v1242_v1, 1  ;;  %v1244_v3 = vpop.eup %1243 }
 0x224   :  { %v957_v4 = vsel %vm102_vm0, %v1244_v3, %v950_v61 }
 0x225   :  { %v965_v5 = vsel %vm964_vm6, %v955_v0, %v956_v2  ;;  %v961_v6 = vsel %vm960_vm7, %v957_v4, %v959_v26 }
 0x226   :  { %v967_v7 = vsel %vm966_vm8, %v963_v38, %v965_v5 }
 0x227   :  { %v969_v8 = vsel %vm968_vm9, %v961_v6, %v967_v7 }
 0x228   :  { %971 = vst [vmem:[#allocation6] sm:$0xff] %v969_v8 }
 0x229   :  { %982 = dma.vmem_to_hbm [thread:$0]  %s978_s26, 128, %s980_s29, [#allocation5]  }
 0x22a   :  { %1295 = dma.done.wait [#allocation5], 128  }
 0x22b   :  { %1296 = vsyncadd [#allocation5], 4294967168 }
 0x22c   :  { %987 = vsyncpa [#allocation4], 1 }
 0x22d   :  { %988 = vsyncpa [#allocation5], 1 }

</bundles_post_ra>
